<compile_context>
chip_gen: v6e
topology: v6e:2x2x1
jax: 0.10.0
libtpu: 0.0.40
codegen_flags: <defaults>
</compile_context>

<pallas_src>
import numpy as np
import jax
import jax.numpy as jnp
from jax import lax
from jax.experimental import pallas as pl
from jax.experimental.pallas import tpu as pltpu

WEIGHT_DTYPE = jnp.bfloat16   # set to jnp.float32 if exact fp32 weights are required


def _out_size(n):
    # Conv2d(kernel=3, stride=2, padding=1) output size.
    return (n + 2 - 3) // 2 + 1


# ----------------------------- Pallas kernel --------------------------------

def _make_decode_kernel(geom, n_batch):
    """geom: tuple of (Hin, Win, Cin, Ho, Wo, Cout, Nout_padded) per layer.

    refs = [x, (t_0, b_0), ..., (t_{L-1}, b_{L-1}), out,
            rows_0..rows_{L-1}, act_0..act_{L-2}]
      x      : (N*Hin0, Win0*Cin0) f32 slab, row = (n, h), lane = (w, c)
      t_l    : (3*Win*Cin, Nout_pad) bf16  taps fused along K; stride-2 + pad in W folded in
      b_l    : (1, Nout_pad)         f32
      rows_l : (N*Ho, 3*Win*Cin)     f32 VMEM scratch (GEMM LHS for layer l)
      act_l  : (N*Ho, Wo*Cout)       f32 VMEM scratch (inter-layer activation, never in HBM)
    """
    num_layers = len(geom)

    def kernel(*refs):
        x_ref = refs[0]
        o_ref = refs[1 + 2 * num_layers]
        rows_refs = refs[2 + 2 * num_layers: 2 + 3 * num_layers]
        act_refs = refs[2 + 3 * num_layers:]

        src = x_ref
        for l, (hin, win, cin, ho, wo, cout, nout) in enumerate(geom):   # static unroll
            t_ref = refs[1 + 2 * l]
            b_ref = refs[2 + 2 * l]
            rows = rows_refs[l]
            k = win * cin
            m = n_batch * ho

            # Stride-2 row selection (conv rows 2*ho-1, 2*ho, 2*ho+1; pad=1 along H).
            # Batch is folded into rows and Hin is even, so even/odd selection is a single
            # strided sublane read across the whole batch (vld slot, no MXU work).
            center = src[pl.ds(0, m, 2), :]          # rows 2*j      -> tap kh = 1
            below = src[pl.ds(1, m, 2), :]           # rows 2*j + 1  -> tap kh = 2
            rows[:, k:2 * k] = center
            rows[:, 2 * k:3 * k] = below
            # Tap kh = 0 (rows 2*j - 1) is `below` shifted down one output row, with a zero
            # row at the top of every image (this realises the H zero padding).
            zrow = jnp.zeros((1, k), jnp.float32)
            for n in range(n_batch):                 # static, n_batch is small
                rows[n * ho:n * ho + 1, 0:k] = zrow
                if ho > 1:
                    rows[n * ho + 1:(n + 1) * ho, 0:k] = below[n * ho:(n + 1) * ho - 1, :]

            # One GEMM per layer: K = 3*Win*Cin (taps fused), bf16 operands, f32 accumulate.
            acc = jnp.dot(rows[...].astype(WEIGHT_DTYPE), t_ref[...],
                          preferred_element_type=jnp.float32)
            act = acc + b_ref[...]                          # f32 epilogue on the VPU
            act = jnp.where(act >= 0, act, 0.01 * act)      # LeakyReLU(0.01)

            if l == num_layers - 1:
                o_ref[...] = act.astype(o_ref.dtype)        # lane-dense store (Nout padded)
            else:
                act_refs[l][...] = act
                src = act_refs[l]

    return kernel


# ------------------------- parameter init / packing --------------------------

def init_decode_net_params(key, in_channels, out_channels, blocks):
    """Deterministic parameter init. Weights stored in HWIO layout (3,3,Cin,Cout)."""
    params = []
    cin = in_channels
    for _ in range(blocks):
        key, kw, kb = jax.random.split(key, 3)
        w = 0.1 * jax.random.normal(kw, (3, 3, cin, out_channels), jnp.float32)
        b = 0.1 * jax.random.normal(kb, (out_channels,), jnp.float32)
        params.append((w, b))
        cin = out_channels
    return params


def pack_decode_params(params, in_hw, weight_dtype=WEIGHT_DTYPE):
    """One-time numpy repackaging of HWIO conv weights into the fused-tap banded form.

    Per layer: t[(kh, w, ci), (wo, co)] = W[kh, w - 2*wo + 1, ci, co] on the band else 0,
    i.e. 3x3 taps + stride-2 subsampling along W + the W zero padding are folded into a
    single (3*Win*Cin, Wo*Cout) matrix (no batch dependence -> no N^2 blow-up).  The last
    layer's columns are zero-padded to a multiple of 128 so the HBM store is lane-dense.
    """
    h_in, w_in = in_hw
    packed, geom = [], []
    num_layers = len(params)
    for idx, (w_hwio, b) in enumerate(params):
        _, _, cin, cout = w_hwio.shape
        assert h_in % 2 == 0, "strided row selection assumes even input height per layer"
        h_out, w_out = _out_size(h_in), _out_size(w_in)

        # place[kw, w, wo] = 1 iff w == 2*wo + kw - 1 (zero blocks realise the W padding)
        place = np.zeros((3, w_in, w_out), np.float32)
        for kw in range(3):
            for wo in range(w_out):
                w = 2 * wo + kw - 1
                if 0 <= w < w_in:
                    place[kw, w, wo] = 1.0

        w_np = np.asarray(w_hwio, np.float32)
        t = np.einsum('xwv,hxio->hwivo', place, w_np)       # (kh, w, ci, wo, co)
        t = t.reshape(3 * w_in * cin, w_out * cout)
        b_row = np.tile(np.asarray(b, np.float32), w_out)[None, :]   # (1, Wo*Cout)

        nout = w_out * cout
        if idx == num_layers - 1:                           # lane-dense final store
            nout_pad = -(-nout // 128) * 128
            if nout_pad != nout:
                t = np.pad(t, ((0, 0), (0, nout_pad - nout)))
                b_row = np.pad(b_row, ((0, 0), (0, nout_pad - nout)))
        else:
            nout_pad = nout

        packed.append((jnp.asarray(t, weight_dtype), jnp.asarray(b_row, jnp.float32)))
        geom.append((h_in, w_in, cin, h_out, w_out, cout, nout_pad))
        h_in, w_in = h_out, w_out
    return packed, tuple(geom)


# ------------------------------ DecodeNet forward ----------------------------

def decode_net_forward_slab(x_slab, packed, geom, n_batch):
    """Production path: lane-dense slab in (N*H, W*Cin) -> padded slab out
    (N*Ho_last, Nout_pad).  No XLA layout ops around the pallas_call."""
    num_layers = len(packed)
    if num_layers == 0:
        return x_slab
    flat = [a for layer in packed for a in layer]

    scratch = [pltpu.VMEM((n_batch * g[3], 3 * g[1] * g[2]), jnp.float32) for g in geom]
    scratch += [pltpu.VMEM((n_batch * g[3], g[6]), jnp.float32) for g in geom[:-1]]

    h_last, nout_last = geom[-1][3], geom[-1][6]
    return pl.pallas_call(
        _make_decode_kernel(geom, n_batch),
        out_shape=jax.ShapeDtypeStruct((n_batch * h_last, nout_last), jnp.float32),
        # Single grid-less invocation: all operands + intermediates are VMEM-resident, the
        # grid-invariant packed weights are not double-buffered, nothing round-trips HBM.
        in_specs=[pl.BlockSpec(memory_space=pltpu.MemorySpace.VMEM)] * (1 + len(flat)),
        out_specs=pl.BlockSpec(memory_space=pltpu.MemorySpace.VMEM),
        scratch_shapes=scratch,
    )(x_slab, *flat)


def decode_net_forward(x_nchw, packed, geom):
    """NCHW wrapper (PyTorch interface parity / testing only).  The transposes here exist
    solely to match torch's layout; production callers should feed the slab directly."""
    if len(packed) == 0:
        return x_nchw
    n, c, h, w = x_nchw.shape
    x_slab = jnp.transpose(x_nchw, (0, 2, 3, 1)).reshape(n * h, w * c)
    out = decode_net_forward_slab(x_slab, packed, geom, n)
    ho, wo, cout = geom[-1][3], geom[-1][4], geom[-1][5]
    out = out[:, :wo * cout].reshape(n, ho, wo, cout)
    return jnp.transpose(out, (0, 3, 1, 2))                 # (n, h, w, c) -> NCHW


def decode_net_reference(x_nchw, params):
    """Pure-JAX reference (lax conv) for correctness checking."""
    x = x_nchw
    for w, b in params:
        y = lax.conv_general_dilated(
            x, w, window_strides=(2, 2), padding=((1, 1), (1, 1)),
            dimension_numbers=("NCHW", "HWIO", "NCHW"))
        y = y + b[None, :, None, None]
        x = jnp.where(y >= 0, y, 0.01 * y)
    return x


# --------------------------------- main ---------------------------------------

if __name__ == "__main__":
    key = jax.random.PRNGKey(0)
    N, Cin, H, W = 2, 4, 16, 16
    Cout, blocks = 8, 2

    k_x, k_p = jax.random.split(key)
    x = jax.random.normal(k_x, (N, Cin, H, W), jnp.float32)
    params = init_decode_net_params(k_p, Cin, Cout, blocks)

    packed, geom = pack_decode_params(params, (H, W))
    fwd = jax.jit(lambda x_: decode_net_forward(x_, packed, geom))

    y = jax.block_until_ready(fwd(x))
    y_ref = decode_net_reference(x, params)

    assert y.shape == y_ref.shape == (N, Cout, H // 4, W // 4), (y.shape, y_ref.shape)
    # bf16 MXU operands with f32 accumulate / f32 epilogue -> ~1e-2-level tolerance.
    assert jnp.allclose(y, y_ref, atol=3e-2, rtol=3e-2), "Pallas kernel mismatch vs reference"

    print("KERNEL_OK")
</pallas_src>

<mosaic_0001>
module attributes {stable_mosaic.version = 11 : i64} {
  func.func @kernel(%arg0: memref<32x64xf32, #tpu.memory_space<vmem>>, %arg1: memref<192x64xbf16, #tpu.memory_space<vmem>>, %arg2: memref<1x64xf32, #tpu.memory_space<vmem>>, %arg3: memref<192x128xbf16, #tpu.memory_space<vmem>>, %arg4: memref<1x128xf32, #tpu.memory_space<vmem>>, %arg5: memref<8x128xf32, #tpu.memory_space<vmem>>, %arg6: memref<16x192xf32, #tpu.memory_space<vmem>>, %arg7: memref<8x192xf32, #tpu.memory_space<vmem>>, %arg8: memref<16x64xf32, #tpu.memory_space<vmem>>) attributes {dimension_semantics = [], scalar_prefetch = 0 : i64, scratch_operands = 3 : i64, tpu.core_type = #tpu.core_type<tc>} {
    %c0 = arith.constant 0 : index
    %c0_0 = arith.constant 0 : index
    %0 = tpu.strided_load %arg0[%c0, %c0_0] {strides = array<i32: 2, 1>} : memref<32x64xf32, #tpu.memory_space<vmem>>, vector<16x64xf32>
    %c1 = arith.constant 1 : index
    %c0_1 = arith.constant 0 : index
    %1 = tpu.strided_load %arg0[%c1, %c0_1] {strides = array<i32: 2, 1>} : memref<32x64xf32, #tpu.memory_space<vmem>>, vector<16x64xf32>
    %c0_2 = arith.constant 0 : index
    %c64 = arith.constant 64 : index
    %2 = vector.load %arg6[%c0_2, %c64] : memref<16x192xf32, #tpu.memory_space<vmem>>, vector<16x64xf32>
    tpu.vector_store %arg6[%c0_2, %c64], %0 {strides = array<i32>} : memref<16x192xf32, #tpu.memory_space<vmem>>, vector<16x64xf32>,
    %c0_3 = arith.constant 0 : index
    %c128 = arith.constant 128 : index
    %3 = vector.load %arg6[%c0_3, %c128] : memref<16x192xf32, #tpu.memory_space<vmem>>, vector<16x64xf32>
    tpu.vector_store %arg6[%c0_3, %c128], %1 {strides = array<i32>} : memref<16x192xf32, #tpu.memory_space<vmem>>, vector<16x64xf32>,
    %cst = arith.constant 0.000000e+00 : f32
    %4 = vector.broadcast %cst : f32 to vector<1x64xf32>
    %c0_4 = arith.constant 0 : index
    %c0_5 = arith.constant 0 : index
    %5 = vector.load %arg6[%c0_4, %c0_5] : memref<16x192xf32, #tpu.memory_space<vmem>>, vector<1x64xf32>
    tpu.vector_store %arg6[%c0_4, %c0_5], %4 {strides = array<i32>} : memref<16x192xf32, #tpu.memory_space<vmem>>, vector<1x64xf32>,
    %6 = vector.extract_strided_slice %1 {offsets = [0, 0], sizes = [7, 64], strides = [1, 1]} : vector<16x64xf32> to vector<7x64xf32>
    %c1_6 = arith.constant 1 : index
    %c0_7 = arith.constant 0 : index
    %7 = vector.load %arg6[%c1_6, %c0_7] : memref<16x192xf32, #tpu.memory_space<vmem>>, vector<7x64xf32>
    tpu.vector_store %arg6[%c1_6, %c0_7], %6 {strides = array<i32>} : memref<16x192xf32, #tpu.memory_space<vmem>>, vector<7x64xf32>,
    %c8 = arith.constant 8 : index
    %c0_8 = arith.constant 0 : index
    %8 = vector.load %arg6[%c8, %c0_8] : memref<16x192xf32, #tpu.memory_space<vmem>>, vector<1x64xf32>
    tpu.vector_store %arg6[%c8, %c0_8], %4 {strides = array<i32>} : memref<16x192xf32, #tpu.memory_space<vmem>>, vector<1x64xf32>,
    %9 = vector.extract_strided_slice %1 {offsets = [8, 0], sizes = [7, 64], strides = [1, 1]} : vector<16x64xf32> to vector<7x64xf32>
    %c9 = arith.constant 9 : index
    %c0_9 = arith.constant 0 : index
    %10 = vector.load %arg6[%c9, %c0_9] : memref<16x192xf32, #tpu.memory_space<vmem>>, vector<7x64xf32>
    tpu.vector_store %arg6[%c9, %c0_9], %9 {strides = array<i32>} : memref<16x192xf32, #tpu.memory_space<vmem>>, vector<7x64xf32>,
    %c0_10 = arith.constant 0 : index
    %c0_11 = arith.constant 0 : index
    %11 = vector.load %arg6[%c0_10, %c0_11] : memref<16x192xf32, #tpu.memory_space<vmem>>, vector<16x192xf32>
    %12 = arith.truncf %11 : vector<16x192xf32> to vector<16x192xbf16>
    %c0_12 = arith.constant 0 : index
    %c0_13 = arith.constant 0 : index
    %13 = vector.load %arg1[%c0_12, %c0_13] : memref<192x64xbf16, #tpu.memory_space<vmem>>, vector<192x64xbf16>
    %cst_14 = arith.constant dense<0.000000e+00> : vector<16x64xf32>
    %14 = tpu.matmul %12, %13, %cst_14 {dimension_numbers = #tpu.dot_dimension_numbers<[1], [0], [0], [1], [0, 0, 1, 1], [], []>} : vector<16x192xbf16>, vector<192x64xbf16>, vector<16x64xf32> -> vector<16x64xf32>
    %c0_15 = arith.constant 0 : index
    %c0_16 = arith.constant 0 : index
    %15 = vector.load %arg2[%c0_15, %c0_16] : memref<1x64xf32, #tpu.memory_space<vmem>>, vector<1x64xf32>
    %16 = vector.broadcast %15 : vector<1x64xf32> to vector<16x64xf32>
    %17 = arith.addf %14, %16 : vector<16x64xf32>
    %cst_17 = arith.constant 0.000000e+00 : f32
    %18 = vector.broadcast %cst_17 : f32 to vector<16x64xf32>
    %19 = arith.cmpf oge, %17, %18 : vector<16x64xf32>
    %cst_18 = arith.constant 0.00999999977 : f32
    %20 = vector.broadcast %cst_18 : f32 to vector<16x64xf32>
    %21 = arith.mulf %20, %17 : vector<16x64xf32>
    %22 = arith.select %19, %17, %21 : vector<16x64xi1>, vector<16x64xf32>
    %c0_19 = arith.constant 0 : index
    %c0_20 = arith.constant 0 : index
    %23 = vector.load %arg8[%c0_19, %c0_20] : memref<16x64xf32, #tpu.memory_space<vmem>>, vector<16x64xf32>
    tpu.vector_store %arg8[%c0_19, %c0_20], %22 {strides = array<i32>} : memref<16x64xf32, #tpu.memory_space<vmem>>, vector<16x64xf32>,
    %c0_21 = arith.constant 0 : index
    %c0_22 = arith.constant 0 : index
    %24 = tpu.strided_load %arg8[%c0_21, %c0_22] {strides = array<i32: 2, 1>} : memref<16x64xf32, #tpu.memory_space<vmem>>, vector<8x64xf32>
    %c1_23 = arith.constant 1 : index
    %c0_24 = arith.constant 0 : index
    %25 = tpu.strided_load %arg8[%c1_23, %c0_24] {strides = array<i32: 2, 1>} : memref<16x64xf32, #tpu.memory_space<vmem>>, vector<8x64xf32>
    %c0_25 = arith.constant 0 : index
    %c64_26 = arith.constant 64 : index
    %26 = vector.load %arg7[%c0_25, %c64_26] : memref<8x192xf32, #tpu.memory_space<vmem>>, vector<8x64xf32>
    tpu.vector_store %arg7[%c0_25, %c64_26], %24 {strides = array<i32>} : memref<8x192xf32, #tpu.memory_space<vmem>>, vector<8x64xf32>,
    %c0_27 = arith.constant 0 : index
    %c128_28 = arith.constant 128 : index
    %27 = vector.load %arg7[%c0_27, %c128_28] : memref<8x192xf32, #tpu.memory_space<vmem>>, vector<8x64xf32>
    tpu.vector_store %arg7[%c0_27, %c128_28], %25 {strides = array<i32>} : memref<8x192xf32, #tpu.memory_space<vmem>>, vector<8x64xf32>,
    %cst_29 = arith.constant 0.000000e+00 : f32
    %28 = vector.broadcast %cst_29 : f32 to vector<1x64xf32>
    %c0_30 = arith.constant 0 : index
    %c0_31 = arith.constant 0 : index
    %29 = vector.load %arg7[%c0_30, %c0_31] : memref<8x192xf32, #tpu.memory_space<vmem>>, vector<1x64xf32>
    tpu.vector_store %arg7[%c0_30, %c0_31], %28 {strides = array<i32>} : memref<8x192xf32, #tpu.memory_space<vmem>>, vector<1x64xf32>,
    %30 = vector.extract_strided_slice %25 {offsets = [0, 0], sizes = [3, 64], strides = [1, 1]} : vector<8x64xf32> to vector<3x64xf32>
    %c1_32 = arith.constant 1 : index
    %c0_33 = arith.constant 0 : index
    %31 = vector.load %arg7[%c1_32, %c0_33] : memref<8x192xf32, #tpu.memory_space<vmem>>, vector<3x64xf32>
    tpu.vector_store %arg7[%c1_32, %c0_33], %30 {strides = array<i32>} : memref<8x192xf32, #tpu.memory_space<vmem>>, vector<3x64xf32>,
    %c4 = arith.constant 4 : index
    %c0_34 = arith.constant 0 : index
    %32 = vector.load %arg7[%c4, %c0_34] : memref<8x192xf32, #tpu.memory_space<vmem>>, vector<1x64xf32>
    tpu.vector_store %arg7[%c4, %c0_34], %28 {strides = array<i32>} : memref<8x192xf32, #tpu.memory_space<vmem>>, vector<1x64xf32>,
    %33 = vector.extract_strided_slice %25 {offsets = [4, 0], sizes = [3, 64], strides = [1, 1]} : vector<8x64xf32> to vector<3x64xf32>
    %c5 = arith.constant 5 : index
    %c0_35 = arith.constant 0 : index
    %34 = vector.load %arg7[%c5, %c0_35] : memref<8x192xf32, #tpu.memory_space<vmem>>, vector<3x64xf32>
    tpu.vector_store %arg7[%c5, %c0_35], %33 {strides = array<i32>} : memref<8x192xf32, #tpu.memory_space<vmem>>, vector<3x64xf32>,
    %c0_36 = arith.constant 0 : index
    %c0_37 = arith.constant 0 : index
    %35 = vector.load %arg7[%c0_36, %c0_37] : memref<8x192xf32, #tpu.memory_space<vmem>>, vector<8x192xf32>
    %36 = arith.truncf %35 : vector<8x192xf32> to vector<8x192xbf16>
    %c0_38 = arith.constant 0 : index
    %c0_39 = arith.constant 0 : index
    %37 = vector.load %arg3[%c0_38, %c0_39] : memref<192x128xbf16, #tpu.memory_space<vmem>>, vector<192x128xbf16>
    %cst_40 = arith.constant dense<0.000000e+00> : vector<8x128xf32>
    %38 = tpu.matmul %36, %37, %cst_40 {dimension_numbers = #tpu.dot_dimension_numbers<[1], [0], [0], [1], [0, 0, 1, 1], [], []>} : vector<8x192xbf16>, vector<192x128xbf16>, vector<8x128xf32> -> vector<8x128xf32>
    %c0_41 = arith.constant 0 : index
    %c0_42 = arith.constant 0 : index
    %39 = vector.load %arg4[%c0_41, %c0_42] : memref<1x128xf32, #tpu.memory_space<vmem>>, vector<1x128xf32>
    %40 = vector.broadcast %39 : vector<1x128xf32> to vector<8x128xf32>
    %41 = arith.addf %38, %40 : vector<8x128xf32>
    %cst_43 = arith.constant 0.000000e+00 : f32
    %42 = vector.broadcast %cst_43 : f32 to vector<8x128xf32>
    %43 = arith.cmpf oge, %41, %42 : vector<8x128xf32>
    %cst_44 = arith.constant 0.00999999977 : f32
    %44 = vector.broadcast %cst_44 : f32 to vector<8x128xf32>
    %45 = arith.mulf %44, %41 : vector<8x128xf32>
    %46 = arith.select %43, %41, %45 : vector<8x128xi1>, vector<8x128xf32>
    %c0_45 = arith.constant 0 : index
    %c0_46 = arith.constant 0 : index
    %47 = vector.load %arg5[%c0_45, %c0_46] : memref<8x128xf32, #tpu.memory_space<vmem>>, vector<8x128xf32>
    tpu.vector_store %arg5[%c0_45, %c0_46], %46 {strides = array<i32>} : memref<8x128xf32, #tpu.memory_space<vmem>>, vector<8x128xf32>,
    return
  }
}

</mosaic_0001>

<bundles_post_ra>
// kernel: _lambda_.1
= control target key start
LH: loop header
LB: loop body
LE: loop exit
PB: predicated region body
PF: predicated region fallthrough
CT: control target
= control target key end

     0   :  { %v449_v1 = vmov 0   ;;  %s450_s20 = smov 64   ;;  %vm39_vm0 = vcmask 523264   ;;  %vm36_vm1 = vcmask 1048064   ;;  %vm42_vm2 = vcmask 516096   ;;  %s620_s0 = inlined_call_operand.vmem [shape: f32[32,64], index: 0, kind: input, shape index: {}]   ;;  %s621_s1 = inlined_call_operand.vmem [shape: bf16[192,64], index: 1, kind: input, shape index: {}]   ;;  %s622_s3 = inlined_call_operand.vmem [shape: bf16[192,128], index: 3, kind: input, shape index: {}]   ;;  %s623_s2 = inlined_call_operand.vmem [shape: f32[1,64], index: 2, kind: input, shape index: {}]   ;;  %s624_s4 = inlined_call_operand.vmem [shape: f32[1,128], index: 4, kind: input, shape index: {}]   ;;  %s625_s5 = inlined_call_operand.vmem [shape: f32[8,128], index: 5, kind: output, shape index: {}]  }
   0x1   :  { %v21_v0 = vld [vmem:[%s620_s0] ss:$2 sm:$0xff]  ;;  %166 = vmatprep.subr.bf16.mxu0 %v449_v1  ;;  %343 = vmatprep.subr.bf16.mxu1 %v449_v1  ;;  %v425_v2 = vld [vmem:[%s621_s1 + $0x38] sm:$0xff]   ;;  %v426_v4 = vld [vmem:[%s621_s1 + $0x30] sm:$0xff]   ;;  %vm47_vm3 = vcmask 523265   ;;  %v451_v22 = vmov 0.0  }
   0x2   :  { %30 = vrot.lane.b32.xlu0 %v21_v0, %s450_s20  ;;  %v391_v3 = vld [vmem:[%s620_s0 + $0x10] ss:$2 sm:$0xff]  ;;  %167 = vmatpush1.bf16.msra.mxu0 %v425_v2  ;;  %v427_v5 = vld [vmem:[%s621_s1 + $0x28] sm:$0xff]   ;;  %v393_v7 = vld [vmem:[%s620_s0 + $0x11] ss:$2 sm:$0xff]  ;;  %vm228_vm6 = vcmask 519169  }
   0x3   :  { %168 = vmatprep.subr.bf16.mxu0 %v449_v1  ;;  %v392_v6 = vld [vmem:[%s620_s0 + $0x1] ss:$2 sm:$0xff]  ;;  %41 = vst.msk [vmem:[#allocation2 + $0x18] sm:$0xff] %vm39_vm0, %v393_v7  ;;  %v429_v9 = vld [vmem:[%s621_s1 + $0x18] sm:$0xff]   ;;  %v430_v12 = vld [vmem:[%s621_s1 + $0x10] sm:$0xff]   ;;  %v51_v23 = vrot.slane %v393_v7, 7 }
   0x4   :  { %40 = vst.msk [vmem:[#allocation2 + $0x8] sm:$0xff] %vm39_vm0, %v392_v6  ;;  %v428_v8 = vld [vmem:[%s621_s1 + $0x20] sm:$0xff]   ;;  %v431_v14 = vld [vmem:[%s621_s1 + $0x8] sm:$0xff]   ;;  %v433_v16 = vld [vmem:[%s621_s1 + $0x58] sm:$0xff]   ;;  %v45_v20 = vrot.slane %v392_v6, 7  ;;  %vm231_vm7 = vcmask 523269  }
   0x5   :  { %v432_v15 = vld [vmem:[%s621_s1] sm:$0xff]   ;;  %v434_v17 = vld [vmem:[%s621_s1 + $0x50] sm:$0xff]   ;;  %v435_v18 = vld [vmem:[%s621_s1 + $0x48] sm:$0xff]  }
   0x6   :  { %32 = vrot.lane.b32.xlu0 %v391_v3, %s450_s20  ;;  %169 = vmatpush1.bf16.msra.mxu0 %v426_v4  ;;  %v436_v19 = vld [vmem:[%s621_s1 + $0x40] sm:$0xff]   ;;  %v437_v28 = vld [vmem:[%s622_s3 + $0x38] sm:$0xff]   ;;  %v438_v29 = vld [vmem:[%s622_s3 + $0x30] sm:$0xff]  }
   0x7   :  { %170 = vmatprep.subr.bf16.mxu0 %v449_v1  ;;  %344 = vmatpush1.bf16.msra.mxu1 %v437_v28  ;;  %v439_v30 = vld [vmem:[%s622_s3 + $0x28] sm:$0xff]   ;;  %v440_v31 = vld [vmem:[%s622_s3 + $0x20] sm:$0xff]   ;;  %v441_v32 = vld [vmem:[%s622_s3 + $0x18] sm:$0xff]  }
   0x8   :  { %345 = vmatprep.subr.bf16.mxu1 %v449_v1  ;;  %v442_v33 = vld [vmem:[%s622_s3 + $0x10] sm:$0xff]   ;;  %v443_v34 = vld [vmem:[%s622_s3 + $0x8] sm:$0xff]   ;;  %v444_v35 = vld [vmem:[%s622_s3] sm:$0xff]  }
   0x9   :  { %v445_v36 = vld [vmem:[%s622_s3 + $0x58] sm:$0xff]   ;;  %v394_v37 = vld [vmem:[%s623_s2] ss:$0 sm:$0xff]  ;;  %v446_v42 = vld [vmem:[%s622_s3 + $0x50] sm:$0xff]  }
   0xa   :  { %171 = vmatpush1.bf16.msra.mxu0 %v427_v5  ;;  %v57_v11 = vld [vmem:[#allocation2 + $0x18] sm:$0xff]  ;;  %v447_v47 = vld [vmem:[%s622_s3 + $0x48] sm:$0xff]   ;;  %v448_v50 = vld [vmem:[%s622_s3 + $0x40] sm:$0xff]  }
   0xb   :  { %172 = vmatprep.subr.bf16.mxu0 %v449_v1  ;;  %v55_v10 = vld [vmem:[#allocation2 + $0x8] sm:$0xff]  ;;  %346 = vmatpush1.bf16.msra.mxu1 %v438_v29  ;;  %v408_v59 = vld [vmem:[%s624_s4] ss:$0 sm:$0xff] }
   0xc   :  { %v59_v13 = vpack.c.bf16 %v57_v11, %v55_v10  ;;  %347 = vmatprep.subr.bf16.mxu1 %v449_v1 }
   0xe   :  { %173 = vmatpush1.bf16.msra.mxu0 %v428_v8  ;;  %407 = vmatprep.mubr.msk.bf16.mxu0 %vm39_vm0, %v59_v13 }
   0xf   :  { %174 = vmatprep.subr.bf16.mxu0 %v449_v1  ;;  %348 = vmatpush1.bf16.msra.mxu1 %v439_v30 }
  0x10   :  { %349 = vmatprep.subr.bf16.mxu1 %v449_v1 }
  0x12   :  { %175 = vmatpush1.bf16.msra.mxu0 %v429_v9 }
  0x13   :  { %176 = vmatprep.subr.bf16.mxu0 %v449_v1  ;;  %350 = vmatpush1.bf16.msra.mxu1 %v440_v31 }
  0x14   :  { %351 = vmatprep.subr.bf16.mxu1 %v449_v1 }
  0x16   :  { %177 = vmatpush1.bf16.msra.mxu0 %v430_v12 }
  0x17   :  { %178 = vmatprep.subr.bf16.mxu0 %v449_v1  ;;  %352 = vmatpush1.bf16.msra.mxu1 %v441_v32 }
  0x18   :  { %353 = vmatprep.subr.bf16.mxu1 %v449_v1 }
  0x1a   :  { %179 = vmatpush1.bf16.msra.mxu0 %v431_v14 }
  0x1b   :  { %180 = vmatprep.subr.bf16.mxu0 %v449_v1  ;;  %354 = vmatpush1.bf16.msra.mxu1 %v442_v33 }
  0x1c   :  { %355 = vmatprep.subr.bf16.mxu1 %v449_v1 }
  0x1e   :  { %181 = vmatpush1.bf16.msra.mxu0 %v432_v15 }
  0x1f   :  { %190 = vmatprep.subr.bf16.mxu0 %v449_v1  ;;  %356 = vmatpush1.bf16.msra.mxu1 %v443_v34 }
  0x20   :  { %357 = vmatprep.subr.bf16.mxu1 %v449_v1 }
  0x22   :  { %191 = vmatpush2.bf16.msra.mxu0 %v433_v16 }
  0x23   :  { %192 = vmatprep.subr.bf16.mxu0 %v449_v1  ;;  %358 = vmatpush1.bf16.msra.mxu1 %v444_v35 }
  0x24   :  { %367 = vmatprep.subr.bf16.mxu1 %v449_v1 }
  0x26   :  { %193 = vmatpush2.bf16.msra.mxu0 %v434_v17 }
  0x27   :  { %194 = vmatprep.subr.bf16.mxu0 %v449_v1  ;;  %368 = vmatpush2.bf16.msra.mxu1 %v445_v36 }
  0x28   :  { %369 = vmatprep.subr.bf16.mxu1 %v449_v1 }
  0x2a   :  { %195 = vmatpush2.bf16.msra.mxu0 %v435_v18 }
  0x2b   :  { %196 = vmatprep.subr.bf16.mxu0 %v449_v1  ;;  %370 = vmatpush2.bf16.msra.mxu1 %v446_v42 }
  0x2c   :  { %371 = vmatprep.subr.bf16.mxu1 %v449_v1 }
  0x2e   :  { %197 = vmatpush2.bf16.msra.mxu0 %v436_v19 }
  0x2f   :  { %372 = vmatpush2.bf16.msra.mxu1 %v447_v47 }
  0x30   :  { %373 = vmatprep.subr.bf16.mxu1 %v449_v1 }
  0x33   :  { %374 = vmatpush2.bf16.msra.mxu1 %v448_v50 }
  0x74   :  { %v31_v21 = vpop.permute.xlu0 %30 }
  0x75   :  { %37 = vst.msk [vmem:[#allocation2] sm:$0xff] %vm36_vm1, %v31_v21 }
  0x76   :  { %43 = vst.msk [vmem:[#allocation2] sm:$0x1] %vm42_vm2, %v451_v22 }
  0x77   :  { %48 = vst.msk [vmem:[#allocation2] sm:$0xfe] %vm47_vm3, %v45_v20 }
  0x78   :  { %v33_v24 = vpop.permute.xlu0 %32 }
  0x79   :  { %38 = vst.msk [vmem:[#allocation2 + $0x10] sm:$0xff] %vm36_vm1, %v33_v24 }
  0x7a   :  { %49 = vst.msk [vmem:[#allocation2 + $0x10] sm:$0x1] %vm42_vm2, %v451_v22 }
  0x7b   :  { %53 = vst.msk [vmem:[#allocation2 + $0x10] sm:$0xfe] %vm47_vm3, %v51_v23 }
  0x7e   :  { %v54_v25 = vld [vmem:[#allocation2] sm:$0xff] }
  0x82   :  { %v56_v26 = vld [vmem:[#allocation2 + $0x10] sm:$0xff] }
  0x83   :  { %v58_v27 = vpack.c.bf16 %v56_v26, %v54_v25 }
  0x85   :  { %199 = vmatmul.mubr.bf16.vlgmr.msra.gmra.mxu0 %v58_v27 }
 0x145   :  { %v200_v38 = vpop.f32.mrf.mxu0 }
 0x146   :  { %v201_v39 = vadd.f32 %v394_v37, %v200_v38 }
 0x147   :  { %v202_v40 = vpop.f32.mrf.mxu0 }
 0x148   :  { %vm207_vm4 = vcmp.ge.f32.partialorder %v201_v39, 0.0  ;;  %v209_v41 = vmul.f32 0.01, %v201_v39 }
 0x149   :  { %v203_v43 = vpop.f32.mrf.mxu0 }
 0x14a   :  { %v211_v44 = vsel %vm207_vm4, %v201_v39, %v209_v41  ;;  %v204_v45 = vadd.f32 %v394_v37, %v203_v43 }
 0x14b   :  { %213 = vst.msk [vmem:[#allocation4] sm:$0xff] %vm39_vm0, %v211_v44  ;;  %v205_v46 = vpop.f32.mrf.mxu0 }
 0x14c   :  { %vm208_vm5 = vcmp.ge.f32.partialorder %v204_v45, 0.0  ;;  %v210_v48 = vmul.f32 0.01, %v204_v45 }
 0x14e   :  { %v212_v49 = vsel %vm208_vm5, %v204_v45, %v210_v48 }
 0x14f   :  { %214 = vst.msk [vmem:[#allocation4 + $0x8] sm:$0xff] %vm39_vm0, %v212_v49 }
 0x156   :  { %v215_v51 = vld [vmem:[#allocation4] ss:$2 sm:$0xff]  ;;  %v217_v52 = vld [vmem:[#allocation4 + $0x1] ss:$2 sm:$0xff] }
 0x157   :  { %219 = vrot.lane.b32.xlu1 %v215_v51, %s450_s20  ;;  %223 = vst.msk [vmem:[#allocation3 + $0x8] sm:$0xff] %vm39_vm0, %v217_v52  ;;  %v226_v55 = vrot.slane %v217_v52, 7 }
 0x15e   :  { %v234_v53 = vld [vmem:[#allocation3 + $0x8] sm:$0xff] }
 0x15f   :  { %v236_v54 = vpack.c.bf16 %v234_v53, %v234_v53 }
 0x161   :  { %421 = vmatprep.mubr.msk.bf16.mxu1 %vm39_vm0, %v236_v54 }
 0x1c9   :  { %v220_v56 = vpop.permute.xlu1 %219 }
 0x1ca   :  { %222 = vst.msk [vmem:[#allocation3] sm:$0xff] %vm36_vm1, %v220_v56 }
 0x1cb   :  { %224 = vst.msk [vmem:[#allocation3] sm:$0x1] %vm42_vm2, %v451_v22  ;;  %230 = vst.msk [vmem:[#allocation3 + $0x4] sm:$0x1] %vm42_vm2, %v451_v22 }
 0x1cc   :  { %229 = vst.msk [vmem:[#allocation3] sm:$0xe] %vm228_vm6, %v226_v55 }
 0x1cd   :  { %232 = vst.msk [vmem:[#allocation3] sm:$0xe0] %vm231_vm7, %v226_v55 }
 0x1d4   :  { %v233_v57 = vld [vmem:[#allocation3] sm:$0xff] }
 0x1d5   :  { %v235_v58 = vpack.c.bf16 %v233_v57, %v233_v57 }
 0x1d7   :  { %376 = vmatmul.mubr.bf16.vlgmr.msra.gmra.mxu1 %v235_v58 }
 0x297   :  { %v377_v60 = vpop.f32.mrf.mxu1 }
 0x298   :  { %v378_v61 = vadd.f32 %v408_v59, %v377_v60 }
 0x299   :  { %v379_v62 = vpop.f32.mrf.mxu1 }
 0x29a   :  { %vm383_vm8 = vcmp.ge.f32.partialorder %v378_v61, 0.0  ;;  %v384_v63 = vmul.f32 0.01, %v378_v61 }
 0x29b   :  { %v380_v0 = vpop.f32.mrf.mxu1 }
 0x29c   :  { %v385_v1 = vsel %vm383_vm8, %v378_v61, %v384_v63 }
 0x29d   :  { %386 = vst [vmem:[%s625_s5] sm:$0xff] %v385_v1  ;;  %v381_v2 = vpop.f32.mrf.mxu1 }

</bundles_post_ra>
